<compile_context>
chip_gen: v7x
topology: tpu7x:2x2x1
jax: 0.10.0
libtpu: 0.0.40
codegen_flags: <defaults>
</compile_context>

<pallas_src>
import jax
import jax.numpy as jnp
from jax.experimental import pallas as pl
from jax.experimental.pallas import tpu as pltpu


def _critic_kernel(s_ref, a_ref, w1s_ref, w1a_ref, b1_ref,
                   w2_ref, b2_ref, w3_ref, b3_ref, o_ref):
    s = s_ref[...]          # (TILE_B, S)  bf16
    a = a_ref[...]          # (TILE_B, A)  bf16

    # fc1 (+fused concat) + ReLU. f32 accumulation on the MXU.
    h1 = (jnp.dot(s, w1s_ref[...], preferred_element_type=jnp.float32)
          + jnp.dot(a, w1a_ref[...], preferred_element_type=jnp.float32)
          + b1_ref[...])
    h1 = jnp.maximum(h1, 0.0).astype(jnp.bfloat16)

    # fc2 + ReLU.
    h2 = jnp.dot(h1, w2_ref[...], preferred_element_type=jnp.float32) + b2_ref[...]
    h2 = jnp.maximum(h2, 0.0)   # f32

    # fc3 (hidden -> 1): VPU multiply + lane reduction instead of an N=1
    # MXU matmul (avoids a full systolic pass for a 1-lane output column).
    w3 = w3_ref[...].astype(jnp.float32)                     # (1, H)
    o_ref[...] = jnp.sum(h2 * w3, axis=-1, keepdims=True) + b3_ref[...]


def _choose_tile_b(B):
    # Small batches: one full-array block (rounded up to the 8-sublane
    # granularity). Large batches: 256-row tiles (multiple of 16 for bf16
    # packing; comfortably within v7x's 64 MiB VMEM with resident weights).
    if B <= 256:
        return max(8, ((B + 7) // 8) * 8)
    return 256


def critic_forward(state, action, params):
    """Pallas implementation of CriticNetwork.forward(state, action)."""
    w1s, w1a, b1, w2, b2, w3, b3 = params
    B, S = state.shape
    A = action.shape[1]
    H = w2.shape[0]

    tile_b = _choose_tile_b(B)
    n_blk = pl.cdiv(B, tile_b)
    Bp = n_blk * tile_b
    if Bp != B:
        pad = Bp - B
        state = jnp.pad(state, ((0, pad), (0, 0)))
        action = jnp.pad(action, ((0, pad), (0, 0)))

    # bf16 inputs: halves activation DMA bytes; dots still accumulate in f32.
    state = state.astype(jnp.bfloat16)
    action = action.astype(jnp.bfloat16)

    # Tiled over batch; weights/biases resident across grid iterations.
    batch_spec = lambda feat: pl.BlockSpec((tile_b, feat), lambda i: (i, 0))
    resident = lambda arr: pl.BlockSpec(arr.shape, lambda i: (0, 0))

    flops = 2 * Bp * ((S + A) * H + H * H + H)
    bytes_accessed = (state.size * 2 + action.size * 2
                      + (w1s.size + w1a.size + w2.size + w3.size) * 2
                      + (b1.size + b2.size + b3.size) * 4
                      + Bp * 1 * 4)
    cost = pl.CostEstimate(flops=flops, transcendentals=0,
                           bytes_accessed=bytes_accessed)

    out = pl.pallas_call(
        _critic_kernel,
        out_shape=jax.ShapeDtypeStruct((Bp, 1), jnp.float32),
        grid=(n_blk,),
        in_specs=[
            batch_spec(S),        # state
            batch_spec(A),        # action
            resident(w1s),        # (S, H)
            resident(w1a),        # (A, H)
            resident(b1),         # (1, H)
            resident(w2),         # (H, H)
            resident(b2),         # (1, H)
            resident(w3),         # (1, H)
            resident(b3),         # (1, 1)
        ],
        out_specs=pl.BlockSpec((tile_b, 1), lambda i: (i, 0)),
        compiler_params=pltpu.CompilerParams(
            dimension_semantics=("parallel",)),
        cost_estimate=cost,
    )(state, action, w1s, w1a, b1, w2, b2, w3, b3)

    return out[:B]


def init_params(key, state_size, action_size, hidden_size=128):
    """Parameter init matching the torch module's fan_in uniform bounds.
    fc1's weight is split into a state part and an action part (fused concat);
    weights in bf16 (MXU-native), biases in f32."""
    in_dim = state_size + action_size
    k1, k2, k3, k4, k5, k6 = jax.random.split(key, 6)

    def uniform(k, shape, fan_in, dtype):
        bound = 1.0 / jnp.sqrt(jnp.float32(fan_in))
        return jax.random.uniform(k, shape, jnp.float32, -bound, bound).astype(dtype)

    w1 = uniform(k1, (in_dim, hidden_size), in_dim, jnp.bfloat16)
    w1s, w1a = w1[:state_size], w1[state_size:]
    b1 = uniform(k2, (1, hidden_size), in_dim, jnp.float32)
    w2 = uniform(k3, (hidden_size, hidden_size), hidden_size, jnp.bfloat16)
    b2 = uniform(k4, (1, hidden_size), hidden_size, jnp.float32)
    w3 = uniform(k5, (1, hidden_size), hidden_size, jnp.bfloat16)   # row vector
    b3 = uniform(k6, (1, 1), hidden_size, jnp.float32)
    return (w1s, w1a, b1, w2, b2, w3, b3)


def _reference(state, action, params):
    """Pure-JAX reference with identical numerics (bf16 weights, f32 acc)."""
    w1s, w1a, b1, w2, b2, w3, b3 = params
    s = state.astype(jnp.bfloat16)
    a = action.astype(jnp.bfloat16)
    h1 = (jnp.dot(s, w1s, preferred_element_type=jnp.float32)
          + jnp.dot(a, w1a, preferred_element_type=jnp.float32) + b1)
    h1 = jnp.maximum(h1, 0.0).astype(jnp.bfloat16)
    h2 = jnp.dot(h1, w2, preferred_element_type=jnp.float32) + b2
    h2 = jnp.maximum(h2, 0.0)
    return jnp.sum(h2 * w3.astype(jnp.float32), axis=-1, keepdims=True) + b3


if __name__ == "__main__":
    key = jax.random.PRNGKey(0)
    k_s, k_a, k_p = jax.random.split(key, 3)

    batch = 8
    state_size = 8
    action_size = 4
    hidden_size = 128   # module default; lane-aligned

    state = jax.random.normal(k_s, (batch, state_size), jnp.float32)
    action = jax.random.normal(k_a, (batch, action_size), jnp.float32)
    params = init_params(k_p, state_size, action_size, hidden_size)

    out = critic_forward(state, action, params)
    out = jax.block_until_ready(out)

    ref = _reference(state, action, params)
    assert out.shape == (batch, 1), out.shape
    assert jnp.allclose(out, ref, atol=1e-2, rtol=1e-2), "mismatch vs reference"

    print("KERNEL_OK")
</pallas_src>

<mosaic_0001>
module attributes {stable_mosaic.version = 11 : i64} {
  func.func @_critic_kernel(%arg0: i32, %arg1: memref<8x8xbf16, #tpu.memory_space<vmem>>, %arg2: memref<8x4xbf16, #tpu.memory_space<vmem>>, %arg3: memref<8x128xbf16, #tpu.memory_space<vmem>>, %arg4: memref<4x128xbf16, #tpu.memory_space<vmem>>, %arg5: memref<1x128xf32, #tpu.memory_space<vmem>>, %arg6: memref<128x128xbf16, #tpu.memory_space<vmem>>, %arg7: memref<1x128xf32, #tpu.memory_space<vmem>>, %arg8: memref<1x128xbf16, #tpu.memory_space<vmem>>, %arg9: memref<1x1xf32, #tpu.memory_space<vmem>>, %arg10: memref<8x1xf32, #tpu.memory_space<vmem>>) attributes {dimension_semantics = [#tpu.dimension_semantics<parallel>], iteration_bounds = array<i64: 1>, scalar_prefetch = 0 : i64, scratch_operands = 0 : i64, tpu.core_type = #tpu.core_type<tc>, window_params = [{transform_indices = @transform_0, window_bounds = array<i64: 8, 8>}, {transform_indices = @transform_1, window_bounds = array<i64: 8, 4>}, {pipeline_mode = #tpu.pipeline_mode<synchronous>, transform_indices = @transform_2, window_bounds = array<i64: 8, 128>}, {pipeline_mode = #tpu.pipeline_mode<synchronous>, transform_indices = @transform_3, window_bounds = array<i64: 4, 128>}, {pipeline_mode = #tpu.pipeline_mode<synchronous>, transform_indices = @transform_4, window_bounds = array<i64: 1, 128>}, {pipeline_mode = #tpu.pipeline_mode<synchronous>, transform_indices = @transform_5, window_bounds = array<i64: 128, 128>}, {pipeline_mode = #tpu.pipeline_mode<synchronous>, transform_indices = @transform_6, window_bounds = array<i64: 1, 128>}, {pipeline_mode = #tpu.pipeline_mode<synchronous>, transform_indices = @transform_7, window_bounds = array<i64: 1, 128>}, {pipeline_mode = #tpu.pipeline_mode<synchronous>, transform_indices = @transform_8, window_bounds = array<i64: 1, 1>}, {transform_indices = @transform_9, window_bounds = array<i64: 8, 1>}]} {
    %c0 = arith.constant 0 : index
    %c0_0 = arith.constant 0 : index
    %0 = vector.load %arg1[%c0, %c0_0] : memref<8x8xbf16, #tpu.memory_space<vmem>>, vector<8x8xbf16>
    %c0_1 = arith.constant 0 : index
    %c0_2 = arith.constant 0 : index
    %1 = vector.load %arg2[%c0_1, %c0_2] : memref<8x4xbf16, #tpu.memory_space<vmem>>, vector<8x4xbf16>
    %c0_3 = arith.constant 0 : index
    %c0_4 = arith.constant 0 : index
    %2 = vector.load %arg3[%c0_3, %c0_4] : memref<8x128xbf16, #tpu.memory_space<vmem>>, vector<8x128xbf16>
    %cst = arith.constant dense<0.000000e+00> : vector<8x128xf32>
    %3 = tpu.matmul %0, %2, %cst {dimension_numbers = #tpu.dot_dimension_numbers<[1], [0], [0], [1], [0, 0, 1, 1], [], []>} : vector<8x8xbf16>, vector<8x128xbf16>, vector<8x128xf32> -> vector<8x128xf32>
    %c0_5 = arith.constant 0 : index
    %c0_6 = arith.constant 0 : index
    %4 = vector.load %arg4[%c0_5, %c0_6] : memref<4x128xbf16, #tpu.memory_space<vmem>>, vector<4x128xbf16>
    %cst_7 = arith.constant dense<0.000000e+00> : vector<8x128xf32>
    %5 = tpu.matmul %1, %4, %cst_7 {dimension_numbers = #tpu.dot_dimension_numbers<[1], [0], [0], [1], [0, 0, 1, 1], [], []>} : vector<8x4xbf16>, vector<4x128xbf16>, vector<8x128xf32> -> vector<8x128xf32>
    %6 = arith.addf %3, %5 : vector<8x128xf32>
    %c0_8 = arith.constant 0 : index
    %c0_9 = arith.constant 0 : index
    %7 = vector.load %arg5[%c0_8, %c0_9] : memref<1x128xf32, #tpu.memory_space<vmem>>, vector<1x128xf32>
    %8 = vector.broadcast %7 : vector<1x128xf32> to vector<8x128xf32>
    %9 = arith.addf %6, %8 : vector<8x128xf32>
    %cst_10 = arith.constant 0.000000e+00 : f32
    %10 = vector.broadcast %cst_10 : f32 to vector<8x128xf32>
    %11 = arith.maximumf %9, %10 : vector<8x128xf32>
    %12 = arith.truncf %11 : vector<8x128xf32> to vector<8x128xbf16>
    %c0_11 = arith.constant 0 : index
    %c0_12 = arith.constant 0 : index
    %13 = vector.load %arg6[%c0_11, %c0_12] : memref<128x128xbf16, #tpu.memory_space<vmem>>, vector<128x128xbf16>
    %cst_13 = arith.constant dense<0.000000e+00> : vector<8x128xf32>
    %14 = tpu.matmul %12, %13, %cst_13 {dimension_numbers = #tpu.dot_dimension_numbers<[1], [0], [0], [1], [0, 0, 1, 1], [], []>} : vector<8x128xbf16>, vector<128x128xbf16>, vector<8x128xf32> -> vector<8x128xf32>
    %c0_14 = arith.constant 0 : index
    %c0_15 = arith.constant 0 : index
    %15 = vector.load %arg7[%c0_14, %c0_15] : memref<1x128xf32, #tpu.memory_space<vmem>>, vector<1x128xf32>
    %16 = vector.broadcast %15 : vector<1x128xf32> to vector<8x128xf32>
    %17 = arith.addf %14, %16 : vector<8x128xf32>
    %cst_16 = arith.constant 0.000000e+00 : f32
    %18 = vector.broadcast %cst_16 : f32 to vector<8x128xf32>
    %19 = arith.maximumf %17, %18 : vector<8x128xf32>
    %c0_17 = arith.constant 0 : index
    %c0_18 = arith.constant 0 : index
    %20 = vector.load %arg8[%c0_17, %c0_18] : memref<1x128xbf16, #tpu.memory_space<vmem>>, vector<1x128xbf16>
    %21 = arith.extf %20 : vector<1x128xbf16> to vector<1x128xf32>
    %22 = vector.broadcast %21 : vector<1x128xf32> to vector<8x128xf32>
    %23 = arith.mulf %19, %22 : vector<8x128xf32>
    %cst_19 = arith.constant dense<0.000000e+00> : vector<8xf32>
    %24 = vector.multi_reduction <add>, %23, %cst_19 [1] : vector<8x128xf32> to vector<8xf32>
    %25 = vector.shape_cast %24 : vector<8xf32> to vector<8x1xf32>
    %c0_20 = arith.constant 0 : index
    %c0_21 = arith.constant 0 : index
    %26 = vector.load %arg9[%c0_20, %c0_21] : memref<1x1xf32, #tpu.memory_space<vmem>>, vector<1x1xf32>
    %27 = vector.broadcast %26 : vector<1x1xf32> to vector<8x1xf32>
    %28 = arith.addf %25, %27 : vector<8x1xf32>
    %c0_22 = arith.constant 0 : index
    %c0_23 = arith.constant 0 : index
    %29 = vector.load %arg10[%c0_22, %c0_23] : memref<8x1xf32, #tpu.memory_space<vmem>>, vector<8x1xf32>
    tpu.vector_store %arg10[%c0_22, %c0_23], %28 {strides = array<i32>} : memref<8x1xf32, #tpu.memory_space<vmem>>, vector<8x1xf32>,
    return
  }
  func.func @transform_0(%arg0: i32) -> (i32, i32) {
    %c0_i32 = arith.constant 0 : i32
    %c0_i32_0 = arith.constant 0 : i32
    return %arg0, %c0_i32 : i32, i32
  }
  func.func @transform_1(%arg0: i32) -> (i32, i32) {
    %c0_i32 = arith.constant 0 : i32
    %c0_i32_0 = arith.constant 0 : i32
    return %arg0, %c0_i32 : i32, i32
  }
  func.func @transform_2(%arg0: i32) -> (i32, i32) {
    %c0_i32 = arith.constant 0 : i32
    %c0_i32_0 = arith.constant 0 : i32
    %c0_i32_1 = arith.constant 0 : i32
    return %c0_i32, %c0_i32_0 : i32, i32
  }
  func.func @transform_3(%arg0: i32) -> (i32, i32) {
    %c0_i32 = arith.constant 0 : i32
    %c0_i32_0 = arith.constant 0 : i32
    %c0_i32_1 = arith.constant 0 : i32
    return %c0_i32, %c0_i32_0 : i32, i32
  }
  func.func @transform_4(%arg0: i32) -> (i32, i32) {
    %c0_i32 = arith.constant 0 : i32
    %c0_i32_0 = arith.constant 0 : i32
    %c0_i32_1 = arith.constant 0 : i32
    return %c0_i32, %c0_i32_0 : i32, i32
  }
  func.func @transform_5(%arg0: i32) -> (i32, i32) {
    %c0_i32 = arith.constant 0 : i32
    %c0_i32_0 = arith.constant 0 : i32
    %c0_i32_1 = arith.constant 0 : i32
    return %c0_i32, %c0_i32_0 : i32, i32
  }
  func.func @transform_6(%arg0: i32) -> (i32, i32) {
    %c0_i32 = arith.constant 0 : i32
    %c0_i32_0 = arith.constant 0 : i32
    %c0_i32_1 = arith.constant 0 : i32
    return %c0_i32, %c0_i32_0 : i32, i32
  }
  func.func @transform_7(%arg0: i32) -> (i32, i32) {
    %c0_i32 = arith.constant 0 : i32
    %c0_i32_0 = arith.constant 0 : i32
    %c0_i32_1 = arith.constant 0 : i32
    return %c0_i32, %c0_i32_0 : i32, i32
  }
  func.func @transform_8(%arg0: i32) -> (i32, i32) {
    %c0_i32 = arith.constant 0 : i32
    %c0_i32_0 = arith.constant 0 : i32
    %c0_i32_1 = arith.constant 0 : i32
    return %c0_i32, %c0_i32_0 : i32, i32
  }
  func.func @transform_9(%arg0: i32) -> (i32, i32) {
    %c0_i32 = arith.constant 0 : i32
    %c0_i32_0 = arith.constant 0 : i32
    return %arg0, %c0_i32 : i32, i32
  }
}

</mosaic_0001>

<bundles_post_ra>
// kernel: tpu_custom_call.1
= control target key start
LH: loop header
LB: loop body
LE: loop exit
PB: predicated region body
PF: predicated region fallthrough
CT: control target
= control target key end

     0   :  { %s487_s0 = inlined_call_operand.vmem [shape: bf16[8,8], index: 0, kind: input, shape index: {}]   ;;  %s488_s1 = inlined_call_operand.vmem [shape: bf16[8,4], index: 1, kind: input, shape index: {}]   ;;  %s489_s2 = inlined_call_operand.vmem [shape: bf16[8,128], index: 2, kind: input, shape index: {}]   ;;  %s490_s3 = inlined_call_operand.vmem [shape: bf16[4,128], index: 3, kind: input, shape index: {}]   ;;  %s491_s4 = inlined_call_operand.vmem [shape: f32[1,128], index: 4, kind: input, shape index: {}]   ;;  %s492_s5 = inlined_call_operand.hbm [shape: bf16[128,128], index: 5, kind: input, shape index: {}]   ;;  %s493_s6 = inlined_call_operand.vmem [shape: f32[1,128], index: 6, kind: input, shape index: {}]   ;;  %s494_s7 = inlined_call_operand.vmem [shape: bf16[1,128], index: 7, kind: input, shape index: {}]   ;;  %s495_s8 = inlined_call_operand.<no memory space> [shape: f32[1,1], index: 8, kind: input, shape index: {}]   ;;  %s496_s9 = inlined_call_operand.vmem [shape: f32[8,1], index: 9, kind: output, shape index: {}]  }
   0x1   :  { %v14_v0 = vstv %s495_s8 }
   0x2   :  { %15 = vst [vmem:[#allocation2] sm:$0x1] %v14_v0 }
   0x3   :  { %16 = vsyncpa [#allocation4], 0  ;;  %s390_s11 = smov [#allocation3]   ;;  %s366_s15 = scalar_lea.hbm %s492_s5, 1024 }
   0x4   :  { %s32_s12 = sshll.u32 %s390_s11, 4  ;;  %p367_p0 = scmp.ne.s32.totalorder %s492_s5, %s366_s15  ;;  %s33_s12 = int_to_ptr.vmem [resolvable:$true] %s32_s12 }
   0x5   :  { %p370_p1 = scmp.lt.u32.totalorder %s366_s15, %s492_s5 }
   0x7   :  { %p372_p2 = pnand %p370_p1, %p367_p0 }
   0x9   :  { %375 = shalt.err (!%p372_p2)
}
   0xa   :  { %s376_s8 = scalar_lea.vmem %s33_s12, 1024  ;;  %p381_p4 = scmp.lt.s32.totalorder %s33_s12, %s33_s12 }
   0xb   :  { %p377_p3 = scmp.ne.s32.totalorder %s33_s12, %s376_s8  ;;  %p382_p5 = scmp.lt.s32.totalorder %s376_s8, %s376_s8 }
   0xd   :  { %p383_p6 = por %p382_p5, %p381_p4 }
   0xf   :  { %p384_p7 = pnand %p383_p6, %p377_p3 }
  0x11   :  { %387 = shalt.err (!%p384_p7)
}
  0x12   :  { %s391_s20 = smov 64   ;;  %s392_s21 = smov 4  }
  0x13   :  { %38 = dma.hbm_to_vmem [thread:$0]  %s492_s5, 1024, %s33_s12, [#allocation4], %s391_s20, %s391_s20, %s392_s21  }
  0x14   :  { %388 = dma.done.wait [#allocation4], 1024  }
  0x15   :  { %389 = vsyncadd [#allocation4], 4294966272  ;;  %v393_v1 = vmov 0.0   ;;  %vm394_vm0 = vmmov 0   ;;  %vm57_vm1 = vcmask 1041408   ;;  %vm105_vm2 = vcmask 1043456  }
  0x16   :  { %321 = vmatprep.subr.bf16.mxu1 %v393_v1  ;;  %323 = vmatprep.mubr.msk.bf16.mxu1 %vm394_vm0, %v393_v1  ;;  %v52_v2 = vld [vmem:[%s490_s3] sm:$0x3]  ;;  %vm53_vm3 = vcmask 31744   ;;  %v359_v8 = vld [vmem:[#allocation3 + $0x8] sm:$0xff]   ;;  %v360_v9 = vld [vmem:[#allocation3 + $0x10] sm:$0xff]   ;;  %vm101_vm4 = vcmask 64512   ;;  %v273_v29 = vlaneseq }
  0x17   :  { %333 = vmatprep.subr.bf16.mxu0 %v393_v1  ;;  %349 = vmatprep.mubr.msk.bf16.mxu0 %vm394_vm0, %v393_v1  ;;  %v51_v3 = vld [vmem:[%s489_s2] sm:$0xf]  ;;  %v59_v4 = vsel %vm57_vm1, %v52_v2, 0  ;;  %v363_v13 = vld [vmem:[#allocation3 + $0x28] sm:$0xff]   ;;  %v364_v14 = vld [vmem:[#allocation3 + $0x30] sm:$0xff]   ;;  %vm288_vm5 = vcmask 7168  }
  0x18   :  { %v50_v5 = vld [vmem:[%s488_s1] sm:$0xf]  ;;  %322 = vmatpush3.bf16.msra.mxu1 %v59_v4  ;;  %v107_v7 = vsel %vm105_vm2, %v51_v3, 0  ;;  %v274_v30 = vshrl.u32 %v273_v29, 7 }
  0x19   :  { %v358_v6 = vld [vmem:[#allocation3] sm:$0xff]   ;;  %327 = vmatprep.subr.bf16.mxu1 %v393_v1  ;;  %v361_v11 = vld [vmem:[#allocation3 + $0x18] sm:$0xff]  }
  0x1a   :  { %334 = vmatpush3.bf16.msra.mxu0 %v358_v6  ;;  %v49_v10 = vld [vmem:[%s487_s0] sm:$0xf]  ;;  %v275_v33 = vsub.s32 0, %v274_v30 }
  0x1b   :  { %324 = vmatmul.mubr.msk.bf16.vlgmr.msra.gmra.mrb[0].mxu1 %vm53_vm3, %v50_v5  ;;  %335 = vmatprep.subr.bf16.mxu0 %v393_v1  ;;  %v362_v12 = vld [vmem:[#allocation3 + $0x20] sm:$0xff]   ;;  %v365_v15 = vld [vmem:[#allocation3 + $0x38] sm:$0xff]  }
  0x1c   :  { %328 = vmatpush3.bf16.msra.mxu1 %v107_v7  ;;  %329 = vmatprep.mubr.msk.bf16.mxu1 %vm394_vm0, %v393_v1  ;;  %v297_v21 = vld [vmem:[%s491_s4] ss:$0 sm:$0xff] }
  0x1d   :  { %v271_v31 = vld [vmem:[%s494_s7] sm:$0x1] }
  0x1e   :  { %336 = vmatpush3.bf16.msra.mxu0 %v359_v8  ;;  %v272_v32 = vunpack.c.l.bf16 %v271_v31  ;;  %v298_v34 = vld [vmem:[%s493_s6] ss:$0 sm:$0xff] }
  0x1f   :  { %337 = vmatprep.subr.bf16.mxu0 %v393_v1  ;;  %v307_v43 = vld [vmem:[#allocation2] ss:$0 sm:$0xff] }
  0x20   :  { %v276_v38 = vrot.slane %v272_v32, %v275_v33 }
  0x22   :  { %338 = vmatpush3.bf16.msra.mxu0 %v360_v9 }
  0x23   :  { %330 = vmatmul.mubr.msk.bf16.vlgmr.msra.gmra.mrb[4].mxu1 %vm101_vm4, %v49_v10  ;;  %339 = vmatprep.subr.bf16.mxu0 %v393_v1 }
  0x26   :  { %340 = vmatpush3.bf16.msra.mxu0 %v361_v11 }
  0x27   :  { %341 = vmatprep.subr.bf16.mxu0 %v393_v1 }
  0x2a   :  { %342 = vmatpush3.bf16.msra.mxu0 %v362_v12 }
  0x2b   :  { %343 = vmatprep.subr.bf16.mxu0 %v393_v1 }
  0x2e   :  { %344 = vmatpush3.bf16.msra.mxu0 %v363_v13 }
  0x2f   :  { %345 = vmatprep.subr.bf16.mxu0 %v393_v1 }
  0x32   :  { %346 = vmatpush3.bf16.msra.mxu0 %v364_v14 }
  0x33   :  { %347 = vmatprep.subr.bf16.mxu0 %v393_v1 }
  0x36   :  { %348 = vmatpush3.bf16.msra.mxu0 %v365_v15 }
  0xee   :  { %v95_v16 = vpop.f32.mrb[0].mxu1 }
  0xef   :  { %v325_v17 = vpop.f32.mrb[1].mxu1 }
  0xf0   :  { %v98_v18 = vpop.f32.mrb[2].mxu1 }
  0xf1   :  { %v326_v19 = vpop.f32.mrb[3].mxu1 }
  0xf6   :  { %v143_v20 = vpop.f32.mrb[4].mxu1 }
  0xf7   :  { %v144_v22 = vadd.f32 %v143_v20, %v95_v16  ;;  %v331_v23 = vpop.f32.mrb[5].mxu1 }
  0xf8   :  { %v146_v24 = vpop.f32.mrb[6].mxu1 }
  0xf9   :  { %v156_v25 = vadd.f32 %v297_v21, %v144_v22  ;;  %v332_v26 = vpop.f32.mrb[7].mxu1 }
  0xfb   :  { %v157_v27 = vmax.f32 %v156_v25, 0.0 }
  0xfd   :  { %v158_v28 = vpack.c.bf16 %v157_v27, %v157_v27 }
  0xff   :  { %350 = vmatmul.mubr.bf16.vlgmr.msra.gmra.mrb[0].mxu0 %v158_v28 }
 0x1d2   :  { %v264_v35 = vpop.f32.mrb[0].mxu0 }
 0x1d3   :  { %v265_v36 = vadd.f32 %v298_v34, %v264_v35  ;;  %v351_v37 = vpop.f32.mrb[1].mxu0 }
 0x1d4   :  { %v267_v39 = vpop.f32.mrb[2].mxu0 }
 0x1d5   :  { %v270_v40 = vmax.f32 %v265_v36, 0.0  ;;  %v352_v41 = vpop.f32.mrb[3].mxu0 }
 0x1d7   :  { %v277_v42 = vmul.f32 %v276_v38, %v270_v40 }
 0x1d9   :  { %278 = vadd.xlane.f32.xlu0 %v277_v42 }
 0x266   :  { %v279_v44 = vpop.xlane.xlu0 %278 }
 0x267   :  { %v287_v45 = vadd.f32 %v307_v43, %v279_v44 }
 0x269   :  { %289 = vst.msk [vmem:[%s496_s9] sm:$0xff] %vm288_vm5, %v287_v45 }
 0x26a   :  { %294 = vsyncpa [#allocation4], 1 }

</bundles_post_ra>
